<compile_context>
chip_gen: v7x
topology: tpu7x:2x2x1
jax: 0.10.0
libtpu: 0.0.40
codegen_flags: <defaults>
</compile_context>

<pallas_src>
import jax
import jax.numpy as jnp
from jax import lax
from jax.experimental import pallas as pl
from jax.experimental.pallas import tpu as pltpu

_LANE = 128
_EPS = 1e-6


def _graphnorm_kernel(m_ref, x_ref, invc_ref, w_ref, b_ref, ms_ref, o_ref):
    m = m_ref[...]                           # [B, N] f32 one-hot membership
    x = x_ref[...].astype(jnp.float32)       # [N, TH] (native dtype over DMA, upcast here)
    invc = invc_ref[...]                     # [B, 1]  = 1 / batch_num_nodes

    # Per-graph mean (segment-sum on the MXU); fold mean_scale at graph granularity.
    mean = jnp.dot(m, x, preferred_element_type=jnp.float32) * invc         # [B, TH]
    mean_scaled = mean * ms_ref[...]                                        # [B, TH]
    # Broadcast back to nodes without materializing m.T (contract on axis 0).
    mean_nodes = lax.dot_general(
        m, mean_scaled, dimension_numbers=(((0,), (0,)), ((), ())),
        preferred_element_type=jnp.float32)                                 # [N, TH]
    sub = x - mean_nodes                                                    # [N, TH]

    # Per-graph (biased) variance of `sub`; fold weight into the rsqrt scale.
    var = jnp.dot(m, sub * sub, preferred_element_type=jnp.float32) * invc  # [B, TH]
    scale = lax.rsqrt(var + _EPS) * w_ref[...]                              # [B, TH]
    scale_nodes = lax.dot_general(
        m, scale, dimension_numbers=(((0,), (0,)), ((), ())),
        preferred_element_type=jnp.float32)                                 # [N, TH]

    o_ref[...] = (sub * scale_nodes + b_ref[...]).astype(o_ref.dtype)


def _vmem_capacity_bytes():
    try:
        cap = getattr(pltpu.get_tpu_info(), "vmem_capacity_bytes", None)
        if cap:
            return int(cap)
    except Exception:
        pass
    return 64 << 20      # conservative (v7x-sized) fallback


def _pick_tile_h(H, N, B, x_bytes, out_bytes, vmem_budget):
    """Largest lane-aligned hidden tile that fits the VMEM budget, with >= 2 tiles
    whenever H >= 256 so v7x's second TensorCore has work (free on v5e/v6e)."""
    if H % _LANE != 0:
        return H          # ragged hidden dim: single full-H block, no HBM padding of x.
    # Per-lane VMEM: double-buffered x/out blocks + ~4 live [N, TH] f32 temporaries.
    per_lane = N * (2 * x_bytes + 2 * out_bytes + 4 * 4)
    fixed = 2 * B * N * 4 + (1 << 20)          # membership matrix + misc headroom
    avail = max(vmem_budget - fixed, per_lane * _LANE)
    th_budget = (avail // per_lane) // _LANE * _LANE
    th_cap = H if H <= _LANE else max(_LANE, (H // 2) // _LANE * _LANE)
    th = max(_LANE, min(th_budget, th_cap, H))
    if th >= 2 * _LANE:
        th = (th // 256) * 256                 # 256-wide MXU friendly when possible
    return th


def graph_norm(x, batch_num_nodes, weight, bias, mean_scale):
    """GraphNorm forward. x: [N, H]; batch_num_nodes: python list/tuple of ints."""
    N, H = x.shape
    B = len(batch_num_nodes)
    assert all(int(n) > 0 for n in batch_num_nodes), "empty graph -> division by zero"
    assert sum(int(n) for n in batch_num_nodes) == N

    counts = jnp.asarray(batch_num_nodes, dtype=jnp.float32)                # [B]
    inv_counts = (1.0 / counts).reshape(B, 1)                               # [B, 1]
    batch_index = jnp.repeat(jnp.arange(B, dtype=jnp.int32),
                             jnp.asarray(batch_num_nodes, dtype=jnp.int32),
                             total_repeat_length=N)                         # [N]
    # One-hot membership (exact in f32); fetched once thanks to the constant
    # BlockSpec index and reused by every hidden tile.
    m = (batch_index[None, :] ==
         jnp.arange(B, dtype=jnp.int32)[:, None]).astype(jnp.float32)       # [B, N]

    w2 = weight.reshape(1, H).astype(jnp.float32)
    b2 = bias.reshape(1, H).astype(jnp.float32)
    ms2 = mean_scale.reshape(1, H).astype(jnp.float32)

    out_dtype = x.dtype
    x_bytes = jnp.dtype(x.dtype).itemsize
    out_bytes = jnp.dtype(out_dtype).itemsize

    vmem_cap = _vmem_capacity_bytes()
    vmem_budget = (vmem_cap * 5) // 8          # ~40 MiB on v7x, ~80 MiB on v5e/v6e
    TH = _pick_tile_h(H, N, B, x_bytes, out_bytes, vmem_budget)
    num_h_tiles = pl.cdiv(H, TH)

    # Real per-step working set: pipelined x/out blocks + ~4 live [N,TH] f32 temps
    # + membership / stats / per-feature params.
    tile_bytes = (N * TH * (2 * x_bytes + 2 * out_bytes + 4 * 4)
                  + 2 * B * N * 4 + 8 * B * TH * 4 + 8 * TH * 4 + 2 * B * 4)
    vmem_limit = int(min(max(2 * tile_bytes, 4 << 20), vmem_budget))

    cost = pl.CostEstimate(
        flops=int(8 * B * N * H),                                  # 4 [B,N]-shaped matmuls
        transcendentals=int(B * H),                                # rsqrt at graph granularity
        bytes_accessed=int(N * H * (x_bytes + out_bytes) + B * N * 4),
    )

    out = pl.pallas_call(
        _graphnorm_kernel,
        out_shape=jax.ShapeDtypeStruct((N, H), out_dtype),
        grid=(num_h_tiles,),
        in_specs=[
            pl.BlockSpec((B, N), lambda i: (0, 0)),      # one-hot membership (constant block)
            pl.BlockSpec((N, TH), lambda i: (0, i)),     # x, tiled over hidden dim
            pl.BlockSpec((B, 1), lambda i: (0, 0)),      # 1 / counts (constant block)
            pl.BlockSpec((1, TH), lambda i: (0, i)),     # weight
            pl.BlockSpec((1, TH), lambda i: (0, i)),     # bias
            pl.BlockSpec((1, TH), lambda i: (0, i)),     # mean_scale
        ],
        out_specs=pl.BlockSpec((N, TH), lambda i: (0, i)),
        compiler_params=pltpu.CompilerParams(
            dimension_semantics=("parallel",),           # H tiles independent -> 2 TCs on v7x
            vmem_limit_bytes=vmem_limit),
        cost_estimate=cost,
    )(m, x, inv_counts, w2, b2, ms2)
    return out


def graph_norm_ref(x, batch_num_nodes, weight, bias, mean_scale):
    """Pure-JAX reference mirroring the PyTorch scatter_add_ code."""
    N, H = x.shape
    B = len(batch_num_nodes)
    counts = jnp.asarray(batch_num_nodes, dtype=jnp.float32)
    batch_index = jnp.repeat(jnp.arange(B), jnp.asarray(batch_num_nodes),
                             total_repeat_length=N)
    xf = x.astype(jnp.float32)
    mean = jax.ops.segment_sum(xf, batch_index, num_segments=B) / counts[:, None]
    sub = xf - mean[batch_index] * mean_scale[None, :]
    var = jax.ops.segment_sum(sub ** 2, batch_index, num_segments=B) / counts[:, None]
    std = jnp.sqrt(var + 1e-6)
    return (weight[None, :] * sub / std[batch_index] + bias[None, :]).astype(x.dtype)


if __name__ == "__main__":
    key = jax.random.PRNGKey(0)

    def run_case(hidden_dim, batch_num_nodes, case_key):
        N = sum(batch_num_nodes)
        kx, kw, kb, km = jax.random.split(case_key, 4)
        x = jax.random.normal(kx, (N, hidden_dim), dtype=jnp.float32)
        # Module inits to ones/zeros/ones; perturb deterministically so the affine
        # part is exercised.
        weight = 1.0 + 0.1 * jax.random.normal(kw, (hidden_dim,), dtype=jnp.float32)
        bias = 0.1 * jax.random.normal(kb, (hidden_dim,), dtype=jnp.float32)
        mean_scale = 1.0 + 0.1 * jax.random.normal(km, (hidden_dim,), dtype=jnp.float32)

        out = jax.block_until_ready(
            graph_norm(x, batch_num_nodes, weight, bias, mean_scale))
        ref = graph_norm_ref(x, batch_num_nodes, weight, bias, mean_scale)
        assert out.shape == (N, hidden_dim)
        assert jnp.allclose(out, ref, atol=1e-5, rtol=1e-5), "mismatch vs reference"

    k1, k2 = jax.random.split(key)
    run_case(32, [3, 5], k1)        # ragged hidden dim -> single full-H block
    run_case(256, [4, 7, 5], k2)    # lane-aligned hidden dim -> two parallel 128-lane tiles

    print("KERNEL_OK")
</pallas_src>

<mosaic_0001>
module attributes {stable_mosaic.version = 11 : i64} {
  func.func @_graphnorm_kernel(%arg0: i32, %arg1: memref<2x8xf32, #tpu.memory_space<vmem>>, %arg2: memref<8x32xf32, #tpu.memory_space<vmem>>, %arg3: memref<2x1xf32, #tpu.memory_space<vmem>>, %arg4: memref<1x32xf32, #tpu.memory_space<vmem>>, %arg5: memref<1x32xf32, #tpu.memory_space<vmem>>, %arg6: memref<1x32xf32, #tpu.memory_space<vmem>>, %arg7: memref<8x32xf32, #tpu.memory_space<vmem>>) attributes {dimension_semantics = [#tpu.dimension_semantics<parallel>], iteration_bounds = array<i64: 1>, scalar_prefetch = 0 : i64, scratch_operands = 0 : i64, tpu.core_type = #tpu.core_type<tc>, window_params = [{pipeline_mode = #tpu.pipeline_mode<synchronous>, transform_indices = @transform_0, window_bounds = array<i64: 2, 8>}, {transform_indices = @transform_1, window_bounds = array<i64: 8, 32>}, {pipeline_mode = #tpu.pipeline_mode<synchronous>, transform_indices = @transform_2, window_bounds = array<i64: 2, 1>}, {transform_indices = @transform_3, window_bounds = array<i64: 1, 32>}, {transform_indices = @transform_4, window_bounds = array<i64: 1, 32>}, {transform_indices = @transform_5, window_bounds = array<i64: 1, 32>}, {transform_indices = @transform_6, window_bounds = array<i64: 8, 32>}]} {
    %c0 = arith.constant 0 : index
    %c0_0 = arith.constant 0 : index
    %0 = vector.load %arg1[%c0, %c0_0] : memref<2x8xf32, #tpu.memory_space<vmem>>, vector<2x8xf32>
    %c0_1 = arith.constant 0 : index
    %c0_2 = arith.constant 0 : index
    %1 = vector.load %arg2[%c0_1, %c0_2] : memref<8x32xf32, #tpu.memory_space<vmem>>, vector<8x32xf32>
    %c0_3 = arith.constant 0 : index
    %c0_4 = arith.constant 0 : index
    %2 = vector.load %arg3[%c0_3, %c0_4] : memref<2x1xf32, #tpu.memory_space<vmem>>, vector<2x1xf32>
    %cst = arith.constant dense<0.000000e+00> : vector<2x32xf32>
    %3 = tpu.matmul %0, %1, %cst {dimension_numbers = #tpu.dot_dimension_numbers<[1], [0], [0], [1], [0, 0, 1, 1], [], []>} : vector<2x8xf32>, vector<8x32xf32>, vector<2x32xf32> -> vector<2x32xf32>
    %4 = vector.broadcast %2 : vector<2x1xf32> to vector<2x32xf32>
    %5 = arith.mulf %3, %4 : vector<2x32xf32>
    %c0_5 = arith.constant 0 : index
    %c0_6 = arith.constant 0 : index
    %6 = vector.load %arg6[%c0_5, %c0_6] : memref<1x32xf32, #tpu.memory_space<vmem>>, vector<1x32xf32>
    %7 = vector.broadcast %6 : vector<1x32xf32> to vector<2x32xf32>
    %8 = arith.mulf %5, %7 : vector<2x32xf32>
    %cst_7 = arith.constant dense<0.000000e+00> : vector<8x32xf32>
    %9 = tpu.matmul %0, %8, %cst_7 {dimension_numbers = #tpu.dot_dimension_numbers<[0], [0], [1], [1], [0, 1, 1, 1], [], []>} : vector<2x8xf32>, vector<2x32xf32>, vector<8x32xf32> -> vector<8x32xf32>
    %10 = arith.subf %1, %9 : vector<8x32xf32>
    %11 = arith.mulf %10, %10 : vector<8x32xf32>
    %cst_8 = arith.constant dense<0.000000e+00> : vector<2x32xf32>
    %12 = tpu.matmul %0, %11, %cst_8 {dimension_numbers = #tpu.dot_dimension_numbers<[1], [0], [0], [1], [0, 0, 1, 1], [], []>} : vector<2x8xf32>, vector<8x32xf32>, vector<2x32xf32> -> vector<2x32xf32>
    %13 = vector.broadcast %2 : vector<2x1xf32> to vector<2x32xf32>
    %14 = arith.mulf %12, %13 : vector<2x32xf32>
    %cst_9 = arith.constant 9.99999997E-7 : f32
    %15 = vector.broadcast %cst_9 : f32 to vector<2x32xf32>
    %16 = arith.addf %14, %15 : vector<2x32xf32>
    %17 = math.rsqrt %16 : vector<2x32xf32>
    %c0_10 = arith.constant 0 : index
    %c0_11 = arith.constant 0 : index
    %18 = vector.load %arg4[%c0_10, %c0_11] : memref<1x32xf32, #tpu.memory_space<vmem>>, vector<1x32xf32>
    %19 = vector.broadcast %18 : vector<1x32xf32> to vector<2x32xf32>
    %20 = arith.mulf %17, %19 : vector<2x32xf32>
    %cst_12 = arith.constant dense<0.000000e+00> : vector<8x32xf32>
    %21 = tpu.matmul %0, %20, %cst_12 {dimension_numbers = #tpu.dot_dimension_numbers<[0], [0], [1], [1], [0, 1, 1, 1], [], []>} : vector<2x8xf32>, vector<2x32xf32>, vector<8x32xf32> -> vector<8x32xf32>
    %22 = arith.mulf %10, %21 : vector<8x32xf32>
    %c0_13 = arith.constant 0 : index
    %c0_14 = arith.constant 0 : index
    %23 = vector.load %arg5[%c0_13, %c0_14] : memref<1x32xf32, #tpu.memory_space<vmem>>, vector<1x32xf32>
    %24 = vector.broadcast %23 : vector<1x32xf32> to vector<8x32xf32>
    %25 = arith.addf %22, %24 : vector<8x32xf32>
    %c0_15 = arith.constant 0 : index
    %c0_16 = arith.constant 0 : index
    %26 = vector.load %arg7[%c0_15, %c0_16] : memref<8x32xf32, #tpu.memory_space<vmem>>, vector<8x32xf32>
    tpu.vector_store %arg7[%c0_15, %c0_16], %25 {strides = array<i32>} : memref<8x32xf32, #tpu.memory_space<vmem>>, vector<8x32xf32>,
    return
  }
  func.func @transform_0(%arg0: i32) -> (i32, i32) {
    %c0_i32 = arith.constant 0 : i32
    %c0_i32_0 = arith.constant 0 : i32
    %c0_i32_1 = arith.constant 0 : i32
    return %c0_i32, %c0_i32_0 : i32, i32
  }
  func.func @transform_1(%arg0: i32) -> (i32, i32) {
    %c0_i32 = arith.constant 0 : i32
    %c0_i32_0 = arith.constant 0 : i32
    return %c0_i32, %arg0 : i32, i32
  }
  func.func @transform_2(%arg0: i32) -> (i32, i32) {
    %c0_i32 = arith.constant 0 : i32
    %c0_i32_0 = arith.constant 0 : i32
    %c0_i32_1 = arith.constant 0 : i32
    return %c0_i32, %c0_i32_0 : i32, i32
  }
  func.func @transform_3(%arg0: i32) -> (i32, i32) {
    %c0_i32 = arith.constant 0 : i32
    %c0_i32_0 = arith.constant 0 : i32
    return %c0_i32, %arg0 : i32, i32
  }
  func.func @transform_4(%arg0: i32) -> (i32, i32) {
    %c0_i32 = arith.constant 0 : i32
    %c0_i32_0 = arith.constant 0 : i32
    return %c0_i32, %arg0 : i32, i32
  }
  func.func @transform_5(%arg0: i32) -> (i32, i32) {
    %c0_i32 = arith.constant 0 : i32
    %c0_i32_0 = arith.constant 0 : i32
    return %c0_i32, %arg0 : i32, i32
  }
  func.func @transform_6(%arg0: i32) -> (i32, i32) {
    %c0_i32 = arith.constant 0 : i32
    %c0_i32_0 = arith.constant 0 : i32
    return %c0_i32, %arg0 : i32, i32
  }
}

</mosaic_0001>

<bundles_post_ra>
// kernel: tpu_custom_call.1
= control target key start
LH: loop header
LB: loop body
LE: loop exit
PB: predicated region body
PF: predicated region fallthrough
CT: control target
= control target key end

     0   :  { %11 = vsyncpa [#allocation3], 0  ;;  %s601_s0 = inlined_call_operand.vmem [shape: f32[2,8], index: 0, kind: input, shape index: {}]   ;;  %s602_s1 = inlined_call_operand.hbm [shape: f32[8,32], index: 1, kind: input, shape index: {}]   ;;  %s603_s2 = inlined_call_operand.vmem [shape: f32[2,1], index: 2, kind: input, shape index: {}]   ;;  %s604_s3 = inlined_call_operand.vmem [shape: f32[1,32], index: 3, kind: input, shape index: {}]   ;;  %s605_s4 = inlined_call_operand.vmem [shape: f32[1,32], index: 4, kind: input, shape index: {}]   ;;  %s606_s5 = inlined_call_operand.vmem [shape: f32[1,32], index: 5, kind: input, shape index: {}]   ;;  %s607_s6 = inlined_call_operand.hbm [shape: f32[8,32], index: 6, kind: output, shape index: {}]  }
   0x1   :  { %12 = vsyncpa [#allocation4], 0  ;;  %s512_s21 = smov [#allocation2]   ;;  %s464_s25 = scalar_lea.hbm %s602_s1, 128 }
   0x2   :  { %s21_s22 = sshll.u32 %s512_s21, 4  ;;  %p465_p0 = scmp.ne.s32.totalorder %s602_s1, %s464_s25  ;;  %s22_s22 = int_to_ptr.vmem [resolvable:$true] %s21_s22 }
   0x3   :  { %p468_p1 = scmp.lt.u32.totalorder %s464_s25, %s602_s1 }
   0x5   :  { %p470_p2 = pnand %p468_p1, %p465_p0 }
   0x7   :  { %473 = shalt.err (!%p470_p2)
}
   0x8   :  { %s474_s30 = scalar_lea.vmem %s22_s22, 128  ;;  %p479_p4 = scmp.lt.s32.totalorder %s22_s22, %s22_s22 }
   0x9   :  { %p475_p3 = scmp.ne.s32.totalorder %s22_s22, %s474_s30  ;;  %p480_p5 = scmp.lt.s32.totalorder %s474_s30, %s474_s30 }
   0xb   :  { %p481_p6 = por %p480_p5, %p479_p4 }
   0xd   :  { %p482_p7 = pnand %p481_p6, %p475_p3 }
   0xf   :  { %485 = shalt.err (!%p482_p7)
}
  0x10   :  { %24 = dma.hbm_to_vmem [thread:$0]  %s602_s1, 128, %s22_s22, [#allocation3]  }
  0x11   :  { %508 = dma.done.wait [#allocation3], 128  }
  0x12   :  { %509 = vsyncadd [#allocation3], 4294967168  ;;  %v513_v0 = vmov 0.0   ;;  %vm514_vm0 = vmmov 0   ;;  %v515_v1 = vmov 0   ;;  %vm39_vm1 = vcmask 64512  }
  0x13   :  { %436 = vmatprep.subr.mxu0 %v513_v0  ;;  %438 = vmatprep.mubr.msk.f32.mxu0 %vm514_vm0, %v513_v0  ;;  %v37_v2 = vld [vmem:[#allocation2] sm:$0xff]  ;;  %vm163_vm2 = vcmask 1041408   ;;  %vm159_vm3 = vcmask 15360   ;;  %s516_s15 = smov [#allocation5]   ;;  %vm402_vm4 = vcmask 261120  }
  0x14   :  { %461 = vset.pattern.permute.xlu0 %v515_v1  ;;  %441 = vmatprep.subr.mxu1 %v513_v0  ;;  %v36_v3 = vld [vmem:[%s601_s0] sm:$0x3]  ;;  %s410_s16 = sshll.u32 %s516_s15, 4  ;;  %s411_s16 = int_to_ptr.vmem [resolvable:$true] %s410_s16 }
  0x15   :  { %443 = vmatprep.mubr.msk.f32.mxu1 %vm514_vm0, %v513_v0  ;;  %v38_v4 = vld [vmem:[%s603_s2] sm:$0x3]  ;;  %437 = vmatpush3.msra.mxu0 %v37_v2  ;;  %p491_p9 = scmp.lt.s32.totalorder %s411_s16, %s411_s16 }
  0x16   :  { %115 = vperm.xlu0 %461, %v38_v4   ;;  %439 = vmatmul.mubr.msk.f32.vlgmr.msra.gmra.mrb[0].mxu0 %vm39_vm1, %v36_v3  ;;  %v420_v7 = vld [vmem:[%s606_s5] ss:$0 sm:$0xff] }
  0x17   :  { %446 = vmatprep.subr.mxu0 %v513_v0  ;;  %448 = vmatprep.mubr.msk.f32.mxu0 %vm514_vm0, %v513_v0  ;;  %v424_v20 = vld [vmem:[%s604_s3] ss:$0 sm:$0xff]  ;;  %s486_s3 = scalar_lea.vmem %s411_s16, 128 }
  0x18   :  { %v427_v24 = vld [vmem:[%s605_s4] ss:$0 sm:$0xff]  ;;  %p487_p8 = scmp.ne.s32.totalorder %s411_s16, %s486_s3  ;;  %p492_p10 = scmp.lt.s32.totalorder %s486_s3, %s486_s3 }
  0x1a   :  { %p493_p11 = por %p492_p10, %p491_p9 }
  0x1c   :  { %p494_p12 = pnand %p493_p11, %p487_p8 }
  0x34   :  { %127 = vxpose.xlu0.b32.start.end [1/1] (short) (narrow) %v36_v3, 8 }
  0x95   :  { %v116_v5 = vpop.permute.xlu0 %115 }
  0xb4   :  { %v143_v11 = vpop.trf.xlu0 }
  0xe9   :  { %v109_v6 = vpop.f32.mrb[0].mxu0 }
  0xea   :  { %v118_v8 = vmul.f32 %v116_v5, %v109_v6  ;;  %v440_v9 = vpop.f32.mrb[1].mxu0 }
  0xec   :  { %v126_v10 = vmul.f32 %v420_v7, %v118_v8 }
  0xee   :  { %442 = vmatpush3.msk.msra.mxu1 %vm163_vm2, %v126_v10 }
  0xef   :  { %444 = vmatmul.mubr.msk.f32.vlgmr.msra.gmra.mrb[0].mxu1 %vm159_vm3, %v143_v11  ;;  %451 = vmatprep.subr.mxu1 %v513_v0 }
  0xf0   :  { %453 = vmatprep.mubr.msk.f32.mxu1 %vm514_vm0, %v513_v0 }
 0x1c2   :  { %v233_v12 = vpop.f32.mrb[0].mxu1 }
 0x1c3   :  { %v237_v13 = vsub.f32 %v37_v2, %v233_v12  ;;  %v445_v14 = vpop.f32.mrb[1].mxu1 }
 0x1c5   :  { %v238_v15 = vmul.f32 %v237_v13, %v237_v13 }
 0x1c7   :  { %447 = vmatpush3.msra.mxu0 %v238_v15 }
 0x1c8   :  { %449 = vmatmul.mubr.msk.f32.vlgmr.msra.gmra.mrb[2].mxu0 %vm39_vm1, %v36_v3 }
 0x29b   :  { %v305_v16 = vpop.f32.mrb[2].mxu0 }
 0x29c   :  { %v309_v17 = vmul.f32 %v305_v16, %v116_v5  ;;  %v450_v18 = vpop.f32.mrb[3].mxu0 }
 0x29e   :  { %v310_v19 = vadd.f32 1e-06, %v309_v17 }
 0x2a0   :  { %462 = vrsqrt.f32 %v310_v19 }
 0x2aa   :  { %v463_v21 = vpop.eup %462 }
 0x2ab   :  { %v319_v22 = vmul.f32 %v463_v21, %v424_v20 }
 0x2ad   :  { %452 = vmatpush3.msk.msra.mxu1 %vm163_vm2, %v319_v22 }
 0x2ae   :  { %454 = vmatmul.mubr.msk.f32.vlgmr.msra.gmra.mrb[2].mxu1 %vm159_vm3, %v143_v11 }
 0x381   :  { %v389_v23 = vpop.f32.mrb[2].mxu1 }
 0x382   :  { %v393_v25 = vmul.f32 %v389_v23, %v237_v13  ;;  %v455_v26 = vpop.f32.mrb[3].mxu1 }
 0x384   :  { %v401_v27 = vadd.f32 %v427_v24, %v393_v25 }
 0x386   :  { %403 = vst.msk [vmem:[#allocation5] sm:$0xff] %vm402_vm4, %v401_v27 }
 0x387   :  { %497 = shalt.err (!%p494_p12)
}
 0x388   :  { %s498_s19 = scalar_lea.hbm %s607_s6, 128 }
 0x389   :  { %p499_p13 = scmp.ne.s32.totalorder %s607_s6, %s498_s19  ;;  %p502_p0 = scmp.lt.u32.totalorder %s498_s19, %s607_s6 }
 0x38b   :  { %p504_p1 = pnand %p502_p0, %p499_p13 }
 0x38d   :  { %507 = shalt.err (!%p504_p1)
}
 0x38e   :  { %413 = dma.vmem_to_hbm [thread:$0]  %s411_s16, 128, %s607_s6, [#allocation4]  }
 0x38f   :  { %510 = dma.done.wait [#allocation4], 128  }
 0x390   :  { %511 = vsyncadd [#allocation4], 4294967168 }
 0x391   :  { %417 = vsyncpa [#allocation3], 1 }
 0x392   :  { %418 = vsyncpa [#allocation4], 1 }

</bundles_post_ra>
